<compile_context>
chip_gen: v7x
topology: tpu7x:2x2x1
jax: 0.10.0
libtpu: 0.0.40
codegen_flags: <defaults>
</compile_context>

<pallas_src>
import jax
import jax.numpy as jnp
from jax.experimental import pallas as pl
from jax.experimental.pallas import tpu as pltpu


def _round_up(x, m):
    return ((x + m - 1) // m) * m


def _linear_kernel(x_ref, wt_ref, b_ref, o_ref):
    # x_ref  : (tm, tk)  input row tile
    # wt_ref : (tk, tn)  pre-transposed weight tile ((K, N) layout)
    # b_ref  : (1, tn)   bias tile (index_map constant in K -> stays resident)
    # o_ref  : (tm, tn)  f32 output tile; doubles as the K-reduction accumulator
    k = pl.program_id(2)

    @pl.when(k == 0)
    def _():
        # Seed the resident output tile with the broadcast bias; the K loop
        # then accumulates matmul partial sums directly on top of it.
        o_ref[...] = jnp.broadcast_to(b_ref[...], o_ref.shape).astype(o_ref.dtype)

    # Canonical accumulate form: MXU-native (m,k)x(k,n), f32 accumulation.
    o_ref[...] += jnp.dot(x_ref[...], wt_ref[...],
                          preferred_element_type=jnp.float32)


def linear_forward(x, weight, bias, *, tile_m=None, tile_n=None, tile_k=None):
    """y = x @ weight.T + bias, computed in a Pallas TPU kernel."""
    B, K = x.shape
    N, Kw = weight.shape
    assert K == Kw, "dim_in mismatch"
    bias = bias.reshape(1, N)

    # One wrapper-side transpose (amortized) -> MXU-native contraction in the
    # kernel and a lane-dense (along N) weight stream.
    w_t = weight.T  # (K, N)

    # Tile defaults: lane/sublane legal ("divisible by (8,128) or equal the
    # full dim"), sized so the double-buffered footprint stays ~10 MiB.
    if tile_m is None:
        tile_m = B if B <= 512 else 512           # mult-of-8 not required when == B
    if tile_n is None:
        tile_n = N if N <= 512 else 512
    if tile_k is None:
        if K <= 1024:
            tile_k = K                            # full-K block, no padding needed
        else:
            tile_k = next((t for t in (1024, 512, 256, 128) if K % t == 0), 1024)

    # v7x has 2 TensorCores sharded over "parallel" grid axes: if the batch
    # axis has a single block, split N into >= 2 blocks so no core sits idle.
    if pl.cdiv(B, tile_m) == 1 and pl.cdiv(N, tile_n) == 1 and N > 128:
        tile_n = max(128, 128 * ((N // 2) // 128))

    # Only the reduction dim needs explicit zero padding (its values feed the
    # accumulation).  Partial M/N blocks are fine: out-of-bounds reads only
    # contaminate output rows/cols that Pallas masks out on writeback.
    if K % tile_k != 0:
        Kp = _round_up(K, tile_k)
        x = jnp.pad(x, ((0, 0), (0, Kp - K)))
        w_t = jnp.pad(w_t, ((0, Kp - K), (0, 0)))
        K = Kp

    grid = (pl.cdiv(B, tile_m), pl.cdiv(N, tile_n), K // tile_k)

    # VMEM budget: double-buffered x / W^T / bias tiles + resident f32 output
    # tile, with slack; capped at 48 MiB (v7x physical VMEM is only 64 MiB).
    tile_bytes = 4 * (tile_m * tile_k + tile_k * tile_n + tile_n + tile_m * tile_n)
    vmem_limit = int(min(max(3 * tile_bytes, 32 * 1024 * 1024), 48 * 1024 * 1024))

    return pl.pallas_call(
        _linear_kernel,
        out_shape=jax.ShapeDtypeStruct((B, N), jnp.float32),
        grid_spec=pltpu.PrefetchScalarGridSpec(
            num_scalar_prefetch=0,
            grid=grid,
            in_specs=[
                pl.BlockSpec((tile_m, tile_k), lambda i, j, k: (i, k)),  # x tile
                pl.BlockSpec((tile_k, tile_n), lambda i, j, k: (k, j)),  # W^T tile
                pl.BlockSpec((1, tile_n), lambda i, j, k: (0, j)),       # bias tile
            ],
            out_specs=pl.BlockSpec((tile_m, tile_n), lambda i, j, k: (i, j)),
        ),
        compiler_params=pltpu.CompilerParams(
            dimension_semantics=("parallel", "parallel", "arbitrary"),
            vmem_limit_bytes=vmem_limit,
        ),
    )(x, w_t, bias)


if __name__ == "__main__":
    # Small shapes implied by the module: a batch of feature vectors.
    B, dim_in, dim_out = 8, 32, 64

    key = jax.random.PRNGKey(0)
    kx, kw, kb = jax.random.split(key, 3)

    # Parameter init matching torch .normal_(1, 0.5) distributionally.
    x = jax.random.normal(kx, (B, dim_in), dtype=jnp.float32)
    weight = 1.0 + 0.5 * jax.random.normal(kw, (dim_out, dim_in), dtype=jnp.float32)
    bias = 1.0 + 0.5 * jax.random.normal(kb, (1, dim_out), dtype=jnp.float32)

    out = jax.block_until_ready(linear_forward(x, weight, bias))
    ref = x @ weight.T + bias
    assert out.shape == (B, dim_out)
    assert jnp.allclose(out, ref, atol=1e-5, rtol=1e-5), "mismatch vs reference"

    # Non-tile-aligned shapes exercise the partial-block + N-split path.
    B2, K2, N2 = 10, 48, 200
    x2 = jax.random.normal(jax.random.PRNGKey(1), (B2, K2), dtype=jnp.float32)
    w2 = 1.0 + 0.5 * jax.random.normal(jax.random.PRNGKey(2), (N2, K2), dtype=jnp.float32)
    b2 = 1.0 + 0.5 * jax.random.normal(jax.random.PRNGKey(3), (1, N2), dtype=jnp.float32)
    out2 = jax.block_until_ready(linear_forward(x2, w2, b2))
    ref2 = x2 @ w2.T + b2
    assert out2.shape == (B2, N2)
    assert jnp.allclose(out2, ref2, atol=1e-4, rtol=1e-4), "mismatch vs reference (partial blocks)"

    print("KERNEL_OK")
</pallas_src>

<mosaic_0001>
module attributes {stable_mosaic.version = 11 : i64} {
  func.func @_linear_kernel(%arg0: i32, %arg1: i32, %arg2: i32, %arg3: memref<8x32xf32, #tpu.memory_space<vmem>>, %arg4: memref<32x64xf32, #tpu.memory_space<vmem>>, %arg5: memref<1x64xf32, #tpu.memory_space<vmem>>, %arg6: memref<8x64xf32, #tpu.memory_space<vmem>>) attributes {dimension_semantics = [#tpu.dimension_semantics<parallel>, #tpu.dimension_semantics<parallel>, #tpu.dimension_semantics<arbitrary>], iteration_bounds = array<i64: 1, 1, 1>, scalar_prefetch = 0 : i64, scratch_operands = 0 : i64, tpu.core_type = #tpu.core_type<tc>, window_params = [{transform_indices = @transform_0, window_bounds = array<i64: 8, 32>}, {transform_indices = @transform_1, window_bounds = array<i64: 32, 64>}, {transform_indices = @transform_2, window_bounds = array<i64: 1, 64>}, {transform_indices = @transform_3, window_bounds = array<i64: 8, 64>}]} {
    %c0_i32 = arith.constant 0 : i32
    %0 = arith.cmpi eq, %arg2, %c0_i32 : i32
    %1 = arith.extui %0 : i1 to i32
    %c0_i32_0 = arith.constant 0 : i32
    %2 = arith.cmpi ne, %1, %c0_i32_0 : i32
    scf.if %2 {
      %c0_8 = arith.constant 0 : index
      %c0_9 = arith.constant 0 : index
      %9 = vector.load %arg5[%c0_8, %c0_9] : memref<1x64xf32, #tpu.memory_space<vmem>>, vector<1x64xf32>
      %10 = vector.shape_cast %9 : vector<1x64xf32> to vector<1x64xf32>
      %11 = vector.broadcast %10 : vector<1x64xf32> to vector<8x64xf32>
      %c0_10 = arith.constant 0 : index
      %c0_11 = arith.constant 0 : index
      %12 = vector.load %arg6[%c0_10, %c0_11] : memref<8x64xf32, #tpu.memory_space<vmem>>, vector<8x64xf32>
      tpu.vector_store %arg6[%c0_10, %c0_11], %11 {strides = array<i32>} : memref<8x64xf32, #tpu.memory_space<vmem>>, vector<8x64xf32>,
    } else {
    }
    %c0 = arith.constant 0 : index
    %c0_1 = arith.constant 0 : index
    %3 = vector.load %arg6[%c0, %c0_1] : memref<8x64xf32, #tpu.memory_space<vmem>>, vector<8x64xf32>
    %c0_2 = arith.constant 0 : index
    %c0_3 = arith.constant 0 : index
    %4 = vector.load %arg3[%c0_2, %c0_3] : memref<8x32xf32, #tpu.memory_space<vmem>>, vector<8x32xf32>
    %c0_4 = arith.constant 0 : index
    %c0_5 = arith.constant 0 : index
    %5 = vector.load %arg4[%c0_4, %c0_5] : memref<32x64xf32, #tpu.memory_space<vmem>>, vector<32x64xf32>
    %cst = arith.constant dense<0.000000e+00> : vector<8x64xf32>
    %6 = tpu.matmul %4, %5, %cst {dimension_numbers = #tpu.dot_dimension_numbers<[1], [0], [0], [1], [0, 0, 1, 1], [], []>} : vector<8x32xf32>, vector<32x64xf32>, vector<8x64xf32> -> vector<8x64xf32>
    %7 = arith.addf %3, %6 : vector<8x64xf32>
    %c0_6 = arith.constant 0 : index
    %c0_7 = arith.constant 0 : index
    %8 = vector.load %arg6[%c0_6, %c0_7] : memref<8x64xf32, #tpu.memory_space<vmem>>, vector<8x64xf32>
    tpu.vector_store %arg6[%c0_6, %c0_7], %7 {strides = array<i32>} : memref<8x64xf32, #tpu.memory_space<vmem>>, vector<8x64xf32>,
    return
  }
  func.func @transform_0(%arg0: i32, %arg1: i32, %arg2: i32) -> (i32, i32) {
    %c0_i32 = arith.constant 0 : i32
    return %arg0, %arg2 : i32, i32
  }
  func.func @transform_1(%arg0: i32, %arg1: i32, %arg2: i32) -> (i32, i32) {
    %c0_i32 = arith.constant 0 : i32
    return %arg2, %arg1 : i32, i32
  }
  func.func @transform_2(%arg0: i32, %arg1: i32, %arg2: i32) -> (i32, i32) {
    %c0_i32 = arith.constant 0 : i32
    %c0_i32_0 = arith.constant 0 : i32
    return %c0_i32, %arg1 : i32, i32
  }
  func.func @transform_3(%arg0: i32, %arg1: i32, %arg2: i32) -> (i32, i32) {
    %c0_i32 = arith.constant 0 : i32
    return %arg0, %arg1 : i32, i32
  }
}

</mosaic_0001>

<bundles_post_ra>
// kernel: tpu_custom_call.1
= control target key start
LH: loop header
LB: loop body
LE: loop exit
PB: predicated region body
PF: predicated region fallthrough
CT: control target
= control target key end

     0   :  { %8 = vsyncpa [#allocation3], 0  ;;  %s333_s0 = inlined_call_operand.hbm [shape: f32[8,32], index: 0, kind: input, shape index: {}]   ;;  %s334_s1 = inlined_call_operand.hbm [shape: f32[32,64], index: 1, kind: input, shape index: {}]   ;;  %s335_s2 = inlined_call_operand.vmem [shape: f32[1,64], index: 2, kind: input, shape index: {}]   ;;  %s336_s3 = inlined_call_operand.hbm [shape: f32[8,64], index: 3, kind: output, shape index: {}]  }
   0x1   :  { %9 = vsyncpa [#allocation6], 0 }
   0x2   :  { %10 = vsyncpa [#allocation4], 0  ;;  %s257_s12 = smov [#allocation2]   ;;  %s258_s14 = smov [#allocation5]  }
   0x3   :  { %s17_s13 = sshll.u32 %s257_s12, 4  ;;  %s26_s15 = sshll.u32 %s258_s14, 4  ;;  %s18_s13 = int_to_ptr.vmem [resolvable:$true] %s17_s13  ;;  %s285_s15 = int_to_ptr.vmem [resolvable:$true] %s26_s15 }
   0x4   :  { %s185_s18 = scalar_lea.hbm %s333_s0, 128 }
   0x5   :  { %p186_p0 = scmp.ne.s32.totalorder %s333_s0, %s185_s18  ;;  %p189_p1 = scmp.lt.u32.totalorder %s185_s18, %s333_s0 }
   0x7   :  { %p191_p2 = pnand %p189_p1, %p186_p0 }
   0x9   :  { %194 = shalt.err (!%p191_p2)
}
   0xa   :  { %s195_s23 = scalar_lea.vmem %s18_s13, 128  ;;  %p200_p4 = scmp.lt.s32.totalorder %s18_s13, %s18_s13 }
   0xb   :  { %p196_p3 = scmp.ne.s32.totalorder %s18_s13, %s195_s23  ;;  %p201_p5 = scmp.lt.s32.totalorder %s195_s23, %s195_s23 }
   0xd   :  { %p202_p6 = por %p201_p5, %p200_p4 }
   0xf   :  { %p203_p7 = pnand %p202_p6, %p196_p3 }
  0x11   :  { %206 = shalt.err (!%p203_p7)
}
  0x12   :  { %20 = dma.hbm_to_vmem [thread:$0]  %s333_s0, 128, %s18_s13, [#allocation3]  }
  0x13   :  { %s207_s28 = scalar_lea.hbm %s334_s1, 512 }
  0x14   :  { %p208_p8 = scmp.ne.s32.totalorder %s334_s1, %s207_s28  ;;  %p211_p9 = scmp.lt.u32.totalorder %s207_s28, %s334_s1 }
  0x16   :  { %p213_p10 = pnand %p211_p9, %p208_p8 }
  0x18   :  { %216 = shalt.err (!%p213_p10)
}
  0x19   :  { %s217_s6 = scalar_lea.vmem %s285_s15, 512  ;;  %p222_p12 = scmp.lt.s32.totalorder %s285_s15, %s285_s15 }
  0x1a   :  { %p218_p11 = scmp.ne.s32.totalorder %s285_s15, %s217_s6  ;;  %p223_p13 = scmp.lt.s32.totalorder %s217_s6, %s217_s6 }
  0x1c   :  { %p224_p0 = por %p223_p13, %p222_p12 }
  0x1e   :  { %p225_p1 = pnand %p224_p0, %p218_p11 }
  0x20   :  { %228 = shalt.err (!%p225_p1)
}
  0x21   :  { %s259_s0 = smov 128   ;;  %s260_s7 = smov 8  }
  0x22   :  { %32 = dma.hbm_to_vmem [thread:$0]  %s334_s1, 512, %s285_s15, [#allocation6], %s259_s0, %s259_s0, %s260_s7  }
  0x23   :  { %251 = dma.done.wait [#allocation3], 128  }
  0x24   :  { %252 = vsyncadd [#allocation3], 4294967168 }
  0x25   :  { %253 = dma.done.wait [#allocation6], 512  }
  0x26   :  { %254 = vsyncadd [#allocation6], 4294966784  ;;  %v261_v0 = vmov 0.0|0.0   ;;  %vm262_vm0 = vmmov 0   ;;  %v263_v1 = vmov 0.0   ;;  %vm52_vm1 = vcmask 523264  }
  0x27   :  { %171 = vmatprep.subr.bf16.mxu0 %v261_v0  ;;  %168 = vmatprep.mubr.msk.f32.mxu0 %vm262_vm0, %v263_v1  ;;  %v153_v2 = vld [vmem:[%s335_s2] ss:$0 sm:$0xff]  ;;  %v56_v3 = vld [vmem:[#allocation5] sm:$0xff]  ;;  %v57_v4 = vld [vmem:[#allocation5 + $0x8] sm:$0xff]  ;;  %vm60_vm2 = vcmask 261120   ;;  %s264_s1 = smov [#allocation7]  }
  0x28   :  { %53 = vst.msk [vmem:[#allocation7] sm:$0xff] %vm52_vm1, %v153_v2  ;;  %v172_v5 = vpack.c.bf16 %v57_v4, %v56_v3  ;;  %v58_v6 = vld [vmem:[#allocation5 + $0x10] sm:$0xff]  ;;  %v59_v7 = vld [vmem:[#allocation5 + $0x18] sm:$0xff]  ;;  %s143_s12 = sshll.u32 %s264_s1, 4  ;;  %s144_s12 = int_to_ptr.vmem [resolvable:$true] %s143_s12 }
  0x29   :  { %v175_v8 = vpack.c.bf16 %v59_v7, %v58_v6  ;;  %v55_v9 = vld [vmem:[#allocation2] sm:$0xff]  ;;  %s229_s2 = scalar_lea.vmem %s144_s12, 128  ;;  %p234_p3 = scmp.lt.s32.totalorder %s144_s12, %s144_s12 }
  0x2a   :  { %173 = vmatpush3.bf16.msra.mxu0 %v172_v5  ;;  %p230_p2 = scmp.ne.s32.totalorder %s144_s12, %s229_s2  ;;  %p235_p4 = scmp.lt.s32.totalorder %s229_s2, %s229_s2 }
  0x2b   :  { %174 = vmatprep.subr.bf16.mxu0 %v261_v0 }
  0x2c   :  { %p236_p5 = por %p235_p4, %p234_p3 }
  0x2e   :  { %176 = vmatpush3.bf16.msra.mxu0 %v175_v8  ;;  %p237_p6 = pnand %p236_p5, %p230_p2 }
  0x2f   :  { %v54_v10 = vld [vmem:[#allocation7] sm:$0xff] }
  0x31   :  { %169 = vmatmul.mubr.msk.f32.vlgmr.msra.gmra.mrb[0].mxu0 %vm60_vm2, %v55_v9 }
 0x104   :  { %v130_v11 = vpop.f32.mrb[0].mxu0 }
 0x105   :  { %v134_v12 = vadd.f32 %v130_v11, %v54_v10  ;;  %v170_v13 = vpop.f32.mrb[1].mxu0 }
 0x107   :  { %136 = vst.msk [vmem:[#allocation7] sm:$0xff] %vm52_vm1, %v134_v12 }
 0x108   :  { %240 = shalt.err (!%p237_p6)
}
 0x109   :  { %s241_s15 = scalar_lea.hbm %s336_s3, 128 }
 0x10a   :  { %p242_p7 = scmp.ne.s32.totalorder %s336_s3, %s241_s15  ;;  %p245_p8 = scmp.lt.u32.totalorder %s241_s15, %s336_s3 }
 0x10c   :  { %p247_p9 = pnand %p245_p8, %p242_p7 }
 0x10e   :  { %250 = shalt.err (!%p247_p9)
}
 0x10f   :  { %146 = dma.vmem_to_hbm [thread:$0]  %s144_s12, 128, %s336_s3, [#allocation4]  }
 0x110   :  { %255 = dma.done.wait [#allocation4], 128  }
 0x111   :  { %256 = vsyncadd [#allocation4], 4294967168 }
 0x112   :  { %150 = vsyncpa [#allocation3], 1 }
 0x113   :  { %151 = vsyncpa [#allocation6], 1 }
 0x114   :  { %152 = vsyncpa [#allocation4], 1 }

</bundles_post_ra>
